<compile_context>
chip_gen: v6e
topology: v6e:2x2x1
jax: 0.10.0
libtpu: 0.0.40
codegen_flags: <defaults>
</compile_context>

<pallas_src>
import numpy as np
import jax
import jax.numpy as jnp
from jax import lax
from jax.experimental import pallas as pl
from jax.experimental.pallas import tpu as pltpu

_VMEM_LIMIT = 32 * 1024 * 1024  # safe on v5e/v6e (128 MiB) and v7x (64 MiB physical)


def _round_up(x, m):
    return (x + m - 1) // m * m


# ---------------------------------------------------------------------------
# Kernel 1: CLIP feature_to_logit  (== CLIP_MODEL.forward hot path)
#   logits_per_image = exp(logit_scale) * l2n(img) @ l2n(txt).T
#   logits_per_text  = logits_per_image.T   (wrapper transpose)
# ---------------------------------------------------------------------------
def _feature_to_logit_kernel(scale_ref, img_ref, txt_ref, lpi_ref):
    img = img_ref[...]
    txt = txt_ref[...]
    # rsqrt (EUP slot) instead of sqrt+divide; eps keeps padded zero rows finite.
    img_n = img * lax.rsqrt(jnp.sum(img * img, axis=-1, keepdims=True) + 1e-12)
    txt_n = txt * lax.rsqrt(jnp.sum(txt * txt, axis=-1, keepdims=True) + 1e-12)
    scale = jnp.exp(scale_ref[0])  # torch: logit_scale.exp()
    lpi_ref[...] = scale * lax.dot_general(
        img_n, txt_n, (((1,), (1,)), ((), ())),
        preferred_element_type=jnp.float32)


def feature_to_logit(image_code, text_features, logit_scale):
    B, D = image_code.shape
    T, Dt = text_features.shape
    assert D == Dt
    img = image_code.astype(jnp.float32)
    txt = text_features.astype(jnp.float32)
    # Tile sizes: sublane-aligned B tile, lane-dense (>=128) T tile; 256x256 when large.
    tb = 256 if B > 256 else _round_up(B, 8)
    tt = 256 if T > 256 else _round_up(T, 128)
    Bp, Tp = _round_up(B, tb), _round_up(T, tt)
    if Bp != B:
        img = jnp.pad(img, ((0, Bp - B), (0, 0)))
    if Tp != T:
        txt = jnp.pad(txt, ((0, Tp - T), (0, 0)))
    smem_scale = pl.BlockSpec((1,), lambda i, j: (0,),
                              memory_space=pltpu.MemorySpace.SMEM)
    lpi_p = pl.pallas_call(
        _feature_to_logit_kernel,
        out_shape=jax.ShapeDtypeStruct((Bp, Tp), jnp.float32),
        grid_spec=pltpu.PrefetchScalarGridSpec(
            num_scalar_prefetch=0,
            grid=(Bp // tb, Tp // tt),
            in_specs=[smem_scale,
                      pl.BlockSpec((tb, D), lambda i, j: (i, 0)),
                      pl.BlockSpec((tt, D), lambda i, j: (j, 0))],
            out_specs=pl.BlockSpec((tb, tt), lambda i, j: (i, j)),
        ),
        compiler_params=pltpu.CompilerParams(
            dimension_semantics=("parallel", "parallel"),
            vmem_limit_bytes=_VMEM_LIMIT),
    )(logit_scale, img, txt)
    lpi = lpi_p[:B, :T]
    return lpi, jnp.transpose(lpi)   # logits_per_text is exactly the transpose


# ---------------------------------------------------------------------------
# Kernel 2a: single linear  y = x @ w_t + b   (w_t stored (K, N), bf16)
# Kernel 2b: fused dual linear — both CLIP_FT heads in ONE pallas_call.
# ---------------------------------------------------------------------------
def _linear_kernel(x_ref, w_ref, b_ref, o_ref):
    o_ref[...] = jnp.dot(x_ref[...].astype(jnp.bfloat16), w_ref[...],
                         preferred_element_type=jnp.float32) + b_ref[...]


def linear(x, w_t, b, *, tm=256):
    M, K = x.shape
    K2, N = w_t.shape
    assert K == K2
    x = x.astype(jnp.float32)
    b2 = b.reshape(1, N)
    vmem = pl.BlockSpec(memory_space=pltpu.MemorySpace.VMEM)
    if M <= tm:   # single whole-array block: no padding, lane-dense 512-wide store
        return pl.pallas_call(
            _linear_kernel,
            out_shape=jax.ShapeDtypeStruct((M, N), jnp.float32),
            in_specs=[vmem, vmem, vmem],
            out_specs=vmem,
            compiler_params=pltpu.CompilerParams(vmem_limit_bytes=_VMEM_LIMIT),
        )(x, w_t, b2)
    # Large-M path: block M only (parallel); ragged edge handled by Pallas masking.
    return pl.pallas_call(
        _linear_kernel,
        out_shape=jax.ShapeDtypeStruct((M, N), jnp.float32),
        grid_spec=pltpu.PrefetchScalarGridSpec(
            num_scalar_prefetch=0,
            grid=(pl.cdiv(M, tm),),
            in_specs=[pl.BlockSpec((tm, K), lambda i: (i, 0)),
                      pl.BlockSpec((K, N), lambda i: (0, 0)),
                      pl.BlockSpec((1, N), lambda i: (0, 0))],
            out_specs=pl.BlockSpec((tm, N), lambda i: (i, 0)),
        ),
        compiler_params=pltpu.CompilerParams(
            dimension_semantics=("parallel",),
            vmem_limit_bytes=_VMEM_LIMIT),
    )(x, w_t, b2)


def _dual_linear_kernel(x1_ref, w1_ref, b1_ref, x2_ref, w2_ref, b2_ref,
                        o1_ref, o2_ref):
    o1_ref[...] = jnp.dot(x1_ref[...].astype(jnp.bfloat16), w1_ref[...],
                          preferred_element_type=jnp.float32) + b1_ref[...]
    o2_ref[...] = jnp.dot(x2_ref[...].astype(jnp.bfloat16), w2_ref[...],
                          preferred_element_type=jnp.float32) + b2_ref[...]


def dual_linear(x1, w1_t, b1, x2, w2_t, b2):
    M1, K1 = x1.shape
    M2, K2 = x2.shape
    N1, N2 = w1_t.shape[1], w2_t.shape[1]
    vmem = pl.BlockSpec(memory_space=pltpu.MemorySpace.VMEM)
    o1, o2 = pl.pallas_call(
        _dual_linear_kernel,
        out_shape=(jax.ShapeDtypeStruct((M1, N1), jnp.float32),
                   jax.ShapeDtypeStruct((M2, N2), jnp.float32)),
        in_specs=[vmem] * 6,
        out_specs=(vmem, vmem),
        compiler_params=pltpu.CompilerParams(vmem_limit_bytes=_VMEM_LIMIT),
    )(x1.astype(jnp.float32), w1_t, b1.reshape(1, N1),
      x2.astype(jnp.float32), w2_t, b2.reshape(1, N2))
    return o1, o2


# ---------------------------------------------------------------------------
# Kernel 3: conv1x1 (bias=False), flipped so Cout=512 lands on the lane / MXU-N axis:
#   per (n, hw-block): out = x_blk(HWblk, C) @ W_t(C, Cout)  -> lane-dense stores.
#   HW is blocked (<=512) so realistic feature maps fit the scoped VMEM limit and the
#   (N, HW) grid exposes parallelism for v7x's second TensorCore.
# ---------------------------------------------------------------------------
def _conv1x1_kernel(x_ref, w_ref, o_ref):
    # x: (1, HWblk, C) f32; w: (C, Cout) bf16  ->  o: (1, HWblk, Cout) f32
    o_ref[0] = jnp.dot(x_ref[0].astype(jnp.bfloat16), w_ref[...],
                       preferred_element_type=jnp.float32)


def conv1x1_nchw(x_nchw, w_t):
    N, C, H, W = x_nchw.shape
    HW = H * W
    Cout = w_t.shape[1]
    # NCHW -> (N, HW, C): one wrapper permute so Cout is the lane/N axis in the kernel.
    x = jnp.transpose(x_nchw.astype(jnp.float32).reshape(N, C, HW), (0, 2, 1))
    hw_blk = HW if HW <= 512 else 512
    out = pl.pallas_call(
        _conv1x1_kernel,
        out_shape=jax.ShapeDtypeStruct((N, HW, Cout), jnp.float32),
        grid_spec=pltpu.PrefetchScalarGridSpec(
            num_scalar_prefetch=0,
            grid=(N, pl.cdiv(HW, hw_blk)),
            in_specs=[pl.BlockSpec((1, hw_blk, C), lambda n, h: (n, h, 0)),
                      pl.BlockSpec((C, Cout), lambda n, h: (0, 0))],
            out_specs=pl.BlockSpec((1, hw_blk, Cout), lambda n, h: (n, h, 0)),
        ),
        compiler_params=pltpu.CompilerParams(
            dimension_semantics=("parallel", "parallel"),
            vmem_limit_bytes=_VMEM_LIMIT),
    )(x, w_t)
    # Back to NCHW (cheap output transpose; far cheaper than lane-sparse HW stores).
    return jnp.transpose(out, (0, 2, 1)).reshape(N, Cout, H, W)


# ---------------------------------------------------------------------------
# Kernel 4: dense_word + LayerNorm(512, eps=1e-12) fused, lane-dense layout:
#   torch: permute(0,2,1) -> Linear(512,nef) -> LayerNorm -> permute back.
#   Kernel computes (L, D) @ (D, nef); LN is a lane-axis reduce; gamma/beta/bias are
#   simple lane broadcasts; the output (B, L, nef) store is lane-dense.
# ---------------------------------------------------------------------------
def _dense_word_ln_kernel(x_ref, w_ref, b_ref, g_ref, bt_ref, o_ref):
    h = jnp.dot(x_ref[0].astype(jnp.bfloat16), w_ref[...],
                preferred_element_type=jnp.float32) + b_ref[...]      # (L, nef)
    mean = jnp.mean(h, axis=-1, keepdims=True)                        # lane reduce
    var = jnp.mean(jnp.square(h - mean), axis=-1, keepdims=True)
    # eps = 1e-12 matches the spec: torch.nn.LayerNorm(512, eps=1e-12)
    o_ref[0] = (h - mean) * lax.rsqrt(var + 1e-12) * g_ref[...] + bt_ref[...]


def dense_word_layernorm(word_embs, w_t, b, gamma, beta):
    B, D, L = word_embs.shape
    nef = w_t.shape[1]
    # Same permute torch does: (B, D, L) -> (B, L, D)
    x = jnp.transpose(word_embs.astype(jnp.float32), (0, 2, 1))
    out = pl.pallas_call(
        _dense_word_ln_kernel,
        out_shape=jax.ShapeDtypeStruct((B, L, nef), jnp.float32),
        grid_spec=pltpu.PrefetchScalarGridSpec(
            num_scalar_prefetch=0,
            grid=(B,),
            in_specs=[pl.BlockSpec((1, L, D), lambda i: (i, 0, 0)),
                      pl.BlockSpec((D, nef), lambda i: (0, 0)),
                      pl.BlockSpec((1, nef), lambda i: (0, 0)),
                      pl.BlockSpec((1, nef), lambda i: (0, 0)),
                      pl.BlockSpec((1, nef), lambda i: (0, 0))],
            out_specs=pl.BlockSpec((1, L, nef), lambda i: (i, 0, 0)),
        ),
        compiler_params=pltpu.CompilerParams(
            dimension_semantics=("parallel",),
            vmem_limit_bytes=_VMEM_LIMIT),
    )(x, w_t, b.reshape(1, nef), gamma.reshape(1, nef), beta.reshape(1, nef))
    return jnp.transpose(out, (0, 2, 1))   # back to (B, nef, L) as torch returns


# ---------------------------------------------------------------------------
# MLP_CLIP / CLIP_MODEL in JAX (parameters deterministically initialized)
# Weights are stored bf16 (pre-transposed to (in, out)); f32 MXU accumulation.
# ---------------------------------------------------------------------------
class MLP_CLIP_Pallas:
    def __init__(self, nef, sent_type, key):
        assert nef == 512, "LayerNorm(512) after dense_word requires nef == 512"
        self.nef = nef
        self.sent_type = sent_type
        ks = jax.random.split(key, 8)
        initrange = 0.1
        lim = 1.0 / np.sqrt(512.0)
        # emb_features: Conv2d(1024, nef, k=1, bias=False), uniform(-0.1, 0.1); stored (C, Cout) bf16.
        self.emb_features_w_t = jax.random.uniform(
            ks[0], (1024, nef), jnp.float32, -initrange, initrange).astype(jnp.bfloat16)
        # dense_word: Linear(512, nef); stored (in, out) bf16, bias f32.
        self.dense_word_w_t = jax.random.uniform(
            ks[1], (512, nef), jnp.float32, -lim, lim).astype(jnp.bfloat16)
        self.dense_word_b = jax.random.uniform(ks[2], (nef,), jnp.float32, -lim, lim)
        if sent_type == 'CLIP_FT':
            self.dense_sent_w_t = jax.random.uniform(
                ks[3], (512, nef), jnp.float32, -lim, lim).astype(jnp.bfloat16)
            self.dense_sent_b = jax.random.uniform(ks[4], (nef,), jnp.float32, -lim, lim)
            # emb_cnn_code weight: uniform(-0.1, 0.1) per init_trainable_weights
            self.emb_cnn_code_w_t = jax.random.uniform(
                ks[5], (512, nef), jnp.float32, -initrange, initrange).astype(jnp.bfloat16)
            self.emb_cnn_code_b = jax.random.uniform(ks[6], (nef,), jnp.float32, -lim, lim)
        # LayerNorm(512, eps=1e-12): default affine init
        self.ln_gamma = jnp.ones((512,), jnp.float32)
        self.ln_beta = jnp.zeros((512,), jnp.float32)

    def image_feature(self, image_code, cnn_feature):
        cnn_out = conv1x1_nchw(cnn_feature, self.emb_features_w_t)
        if self.sent_type == 'CLIP_FT':
            image_code = linear(image_code, self.emb_cnn_code_w_t, self.emb_cnn_code_b)
        return image_code, cnn_out

    def sent_feature(self, word_embs, text_features):
        word_out = dense_word_layernorm(word_embs, self.dense_word_w_t, self.dense_word_b,
                                        self.ln_gamma, self.ln_beta)
        if self.sent_type == 'CLIP_FT':
            text_features = linear(text_features, self.dense_sent_w_t, self.dense_sent_b)
        return word_out, text_features

    def features(self, image_code, cnn_feature, word_embs, text_features):
        """Fused path: both CLIP_FT linear heads share ONE pallas_call."""
        cnn_out = conv1x1_nchw(cnn_feature, self.emb_features_w_t)
        word_out = dense_word_layernorm(word_embs, self.dense_word_w_t, self.dense_word_b,
                                        self.ln_gamma, self.ln_beta)
        if self.sent_type == 'CLIP_FT':
            image_code, text_features = dual_linear(
                image_code, self.emb_cnn_code_w_t, self.emb_cnn_code_b,
                text_features, self.dense_sent_w_t, self.dense_sent_b)
        return image_code, cnn_out, word_out, text_features


class CLIP_MODEL_Pallas:
    def __init__(self, nef, sent_type, key):
        self.nef = nef
        self.sent_type = sent_type
        # CLIP's learned logit_scale is initialized to ln(1/0.07)
        self.logit_scale = jnp.array([np.log(1.0 / 0.07)], dtype=jnp.float32)
        self.MLP = MLP_CLIP_Pallas(nef=nef, sent_type=sent_type, key=key)

    def forward(self, image_code, text_features):
        return feature_to_logit(image_code.astype(jnp.float32),
                                text_features.astype(jnp.float32),
                                self.logit_scale)


if __name__ == "__main__":
    key = jax.random.PRNGKey(0)
    k_param, k1, k2, k3, k4 = jax.random.split(key, 5)
    HI = lax.Precision.HIGHEST

    nef = 512  # MLP_CLIP applies LayerNorm(512) after dense_word => nef must be 512
    model = CLIP_MODEL_Pallas(nef=nef, sent_type='CLIP_FT', key=k_param)

    B_img, B_txt, D = 2, 4, 512
    image_code = jax.random.normal(k1, (B_img, D), jnp.float32)
    text_features = jax.random.normal(k2, (B_txt, D), jnp.float32)

    # ---- CLIP_MODEL.forward ----
    lpi, lpt = model.forward(image_code, text_features)
    jax.block_until_ready((lpi, lpt))

    img_n = image_code / jnp.linalg.norm(image_code, axis=1, keepdims=True)
    txt_n = text_features / jnp.linalg.norm(text_features, axis=1, keepdims=True)
    ref_lpi = np.exp(np.log(1.0 / 0.07)) * np.asarray(img_n @ txt_n.T)
    assert lpi.shape == (B_img, B_txt) and lpt.shape == (B_txt, B_img)
    assert np.allclose(np.asarray(lpi), ref_lpi, atol=1e-3, rtol=1e-3)
    assert np.allclose(np.asarray(lpt), ref_lpi.T, atol=1e-3, rtol=1e-3)

    # ---- MLP_CLIP heads (fused path) ----
    cnn_feature = jax.random.normal(k3, (2, 1024, 4, 4), jnp.float32)  # NCHW
    word_embs = jax.random.normal(k4, (2, 512, 8), jnp.float32)        # (B, 512, L)

    img_code_out, cnn_out, word_out, txt_out = model.MLP.features(
        image_code, cnn_feature, word_embs, text_features)
    jax.block_until_ready((img_code_out, cnn_out, word_out, txt_out))

    assert cnn_out.shape == (2, nef, 4, 4)
    assert img_code_out.shape == (B_img, nef)
    assert word_out.shape == (2, nef, 8)
    assert txt_out.shape == (B_txt, nef)

    # References use the same bf16-rounded weights/activations as the kernels
    # (f32 accumulation), so the comparison is against the model actually implemented.
    bf = lambda a: a.astype(jnp.bfloat16).astype(jnp.float32)

    # conv1x1 reference
    w_conv = model.MLP.emb_features_w_t.astype(jnp.float32)           # (C, Cout)
    ref_cnn = jnp.einsum('nchw,co->nohw', bf(cnn_feature), w_conv, precision=HI)
    assert np.allclose(np.asarray(cnn_out), np.asarray(ref_cnn), atol=2e-3, rtol=2e-3)

    # fused linear head references
    w_icc = model.MLP.emb_cnn_code_w_t.astype(jnp.float32)
    ref_img_code = jnp.dot(bf(image_code), w_icc, precision=HI) + model.MLP.emb_cnn_code_b
    assert np.allclose(np.asarray(img_code_out), np.asarray(ref_img_code), atol=2e-3, rtol=2e-3)
    w_sent = model.MLP.dense_sent_w_t.astype(jnp.float32)
    ref_txt = jnp.dot(bf(text_features), w_sent, precision=HI) + model.MLP.dense_sent_b
    assert np.allclose(np.asarray(txt_out), np.asarray(ref_txt), atol=2e-3, rtol=2e-3)

    # dense_word + LayerNorm reference
    w_word = model.MLP.dense_word_w_t.astype(jnp.float32)             # (D, nef)
    x_bln = bf(jnp.transpose(word_embs, (0, 2, 1)))                   # (B, L, D)
    ref_h = jnp.einsum('bld,dn->bln', x_bln, w_word, precision=HI) + model.MLP.dense_word_b
    mu = ref_h.mean(-1, keepdims=True)
    var = jnp.square(ref_h - mu).mean(-1, keepdims=True)
    ref_word = (ref_h - mu) / jnp.sqrt(var + 1e-12) * model.MLP.ln_gamma + model.MLP.ln_beta
    ref_word = jnp.transpose(ref_word, (0, 2, 1))
    assert np.allclose(np.asarray(word_out), np.asarray(ref_word), atol=2e-3, rtol=2e-3)

    # ---- individual (non-fused) API methods still work and agree with the fused path ----
    img_code_sep, cnn_sep = model.MLP.image_feature(image_code, cnn_feature)
    word_sep, txt_sep = model.MLP.sent_feature(word_embs, text_features)
    jax.block_until_ready((img_code_sep, cnn_sep, word_sep, txt_sep))
    assert np.allclose(np.asarray(img_code_sep), np.asarray(img_code_out), atol=1e-3, rtol=1e-3)
    assert np.allclose(np.asarray(cnn_sep), np.asarray(cnn_out), atol=1e-3, rtol=1e-3)
    assert np.allclose(np.asarray(word_sep), np.asarray(word_out), atol=1e-3, rtol=1e-3)
    assert np.allclose(np.asarray(txt_sep), np.asarray(txt_out), atol=1e-3, rtol=1e-3)

    print("KERNEL_OK")
</pallas_src>

<mosaic_0001>
module attributes {stable_mosaic.version = 11 : i64} {
  func.func @_feature_to_logit_kernel(%arg0: i32, %arg1: i32, %arg2: memref<1xf32, #tpu.memory_space<smem>>, %arg3: memref<8x512xf32, #tpu.memory_space<vmem>>, %arg4: memref<128x512xf32, #tpu.memory_space<vmem>>, %arg5: memref<8x128xf32, #tpu.memory_space<vmem>>) attributes {dimension_semantics = [#tpu.dimension_semantics<parallel>, #tpu.dimension_semantics<parallel>], iteration_bounds = array<i64: 1, 1>, scalar_prefetch = 0 : i64, scratch_operands = 0 : i64, tpu.core_type = #tpu.core_type<tc>, window_params = [{transform_indices = @transform_0, window_bounds = array<i64: 1>}, {transform_indices = @transform_1, window_bounds = array<i64: 8, 512>}, {transform_indices = @transform_2, window_bounds = array<i64: 128, 512>}, {transform_indices = @transform_3, window_bounds = array<i64: 8, 128>}]} {
    %c0 = arith.constant 0 : index
    %c0_0 = arith.constant 0 : index
    %0 = vector.load %arg3[%c0, %c0_0] : memref<8x512xf32, #tpu.memory_space<vmem>>, vector<8x512xf32>
    %c0_1 = arith.constant 0 : index
    %c0_2 = arith.constant 0 : index
    %1 = vector.load %arg4[%c0_1, %c0_2] : memref<128x512xf32, #tpu.memory_space<vmem>>, vector<128x512xf32>
    %2 = arith.mulf %0, %0 : vector<8x512xf32>
    %cst = arith.constant dense<0.000000e+00> : vector<8xf32>
    %3 = vector.multi_reduction <add>, %2, %cst [1] : vector<8x512xf32> to vector<8xf32>
    %4 = vector.shape_cast %3 : vector<8xf32> to vector<8x1xf32>
    %cst_3 = arith.constant 9.99999996E-13 : f32
    %5 = vector.broadcast %cst_3 : f32 to vector<8x1xf32>
    %6 = arith.addf %4, %5 : vector<8x1xf32>
    %7 = math.rsqrt %6 : vector<8x1xf32>
    %8 = vector.broadcast %7 : vector<8x1xf32> to vector<8x512xf32>
    %9 = arith.mulf %0, %8 : vector<8x512xf32>
    %10 = arith.mulf %1, %1 : vector<128x512xf32>
    %cst_4 = arith.constant dense<0.000000e+00> : vector<128xf32>
    %11 = vector.multi_reduction <add>, %10, %cst_4 [1] : vector<128x512xf32> to vector<128xf32>
    %12 = vector.shape_cast %11 : vector<128xf32> to vector<128x1xf32>
    %cst_5 = arith.constant 9.99999996E-13 : f32
    %13 = vector.broadcast %cst_5 : f32 to vector<128x1xf32>
    %14 = arith.addf %12, %13 : vector<128x1xf32>
    %15 = math.rsqrt %14 : vector<128x1xf32>
    %16 = vector.broadcast %15 : vector<128x1xf32> to vector<128x512xf32>
    %17 = arith.mulf %1, %16 : vector<128x512xf32>
    %c0_6 = arith.constant 0 : index
    %18 = memref.load %arg2[%c0_6] : memref<1xf32, #tpu.memory_space<smem>>
    %19 = math.exp %18 : f32
    %cst_7 = arith.constant dense<0.000000e+00> : vector<8x128xf32>
    %20 = tpu.matmul %9, %17, %cst_7 {dimension_numbers = #tpu.dot_dimension_numbers<[1], [1], [0], [0], [0, 0, 1, 0], [], []>} : vector<8x512xf32>, vector<128x512xf32>, vector<8x128xf32> -> vector<8x128xf32>
    %21 = vector.broadcast %19 : f32 to vector<8x128xf32>
    %22 = arith.mulf %21, %20 : vector<8x128xf32>
    %c0_8 = arith.constant 0 : index
    %c0_9 = arith.constant 0 : index
    %23 = vector.load %arg5[%c0_8, %c0_9] : memref<8x128xf32, #tpu.memory_space<vmem>>, vector<8x128xf32>
    tpu.vector_store %arg5[%c0_8, %c0_9], %22 {strides = array<i32>} : memref<8x128xf32, #tpu.memory_space<vmem>>, vector<8x128xf32>,
    return
  }
  func.func @transform_0(%arg0: i32, %arg1: i32) -> i32 {
    %c0_i32 = arith.constant 0 : i32
    %c0_i32_0 = arith.constant 0 : i32
    return %c0_i32 : i32
  }
  func.func @transform_1(%arg0: i32, %arg1: i32) -> (i32, i32) {
    %c0_i32 = arith.constant 0 : i32
    %c0_i32_0 = arith.constant 0 : i32
    return %arg0, %c0_i32 : i32, i32
  }
  func.func @transform_2(%arg0: i32, %arg1: i32) -> (i32, i32) {
    %c0_i32 = arith.constant 0 : i32
    %c0_i32_0 = arith.constant 0 : i32
    return %arg1, %c0_i32 : i32, i32
  }
  func.func @transform_3(%arg0: i32, %arg1: i32) -> (i32, i32) {
    %c0_i32 = arith.constant 0 : i32
    return %arg0, %arg1 : i32, i32
  }
}

</mosaic_0001>

<bundles_post_ra>
// kernel: tpu_custom_call.1
= control target key start
LH: loop header
LB: loop body
LE: loop exit
PB: predicated region body
PF: predicated region fallthrough
CT: control target
= control target key end

     0   :  { %9 = vsyncpa [#allocation4], 0  ;;  %s1024_s0 = inlined_call_operand.<no memory space> [shape: f32[1], index: 0, kind: input, shape index: {}]   ;;  %s1025_s1 = inlined_call_operand.hbm [shape: f32[8,512], index: 1, kind: input, shape index: {}]   ;;  %s1026_s2 = inlined_call_operand.hbm [shape: f32[128,512], index: 2, kind: input, shape index: {}]   ;;  %s1027_s3 = inlined_call_operand.hbm [shape: f32[8,128], index: 3, kind: output, shape index: {}]  }
   0x1   :  { %10 = vsyncpa [#allocation7], 0 }
   0x2   :  { %11 = vsyncpa [#allocation5], 0  ;;  %s638_s12 = smov [#allocation3]   ;;  %s639_s14 = smov [#allocation6]  }
   0x3   :  { %s20_s13 = sshll.u32 %s638_s12, 4  ;;  %s29_s15 = sshll.u32 %s639_s14, 4  ;;  %s21_s13 = int_to_ptr.vmem [resolvable:$true] %s20_s13  ;;  %s30_s15 = int_to_ptr.vmem [resolvable:$true] %s29_s15 }
   0x4   :  { %s580_s16 = scalar_lea.vmem %s21_s13, 512  ;;  %p585_p1 = scmp.lt.s32.totalorder %s21_s13, %s21_s13 }
   0x5   :  { %p581_p0 = scmp.ne.s32.totalorder %s21_s13, %s580_s16  ;;  %p586_p2 = scmp.lt.s32.totalorder %s580_s16, %s580_s16 }
   0x7   :  { %p587_p3 = por %p586_p2, %p585_p1 }
   0x9   :  { %p588_p4 = pnand %p587_p3, %p581_p0 }
   0xb   :  { %591 = shalt.err (!%p588_p4)
}
   0xc   :  { %23 = dma.hbm_to_vmem [thread:$0]  %s1025_s1, 512, %s21_s13, [#allocation4]  }
   0xd   :  { %s600_s19 = scalar_lea.vmem %s30_s15, 8192  ;;  %p605_p6 = scmp.lt.s32.totalorder %s30_s15, %s30_s15 }
   0xe   :  { %p601_p5 = scmp.ne.s32.totalorder %s30_s15, %s600_s19  ;;  %p606_p7 = scmp.lt.s32.totalorder %s600_s19, %s600_s19 }
  0x10   :  { %p607_p8 = por %p606_p7, %p605_p6 }
  0x12   :  { %p608_p9 = pnand %p607_p8, %p601_p5 }
  0x14   :  { %611 = shalt.err (!%p608_p9)
}
  0x15   :  { %s640_s20 = smov 512   ;;  %s641_s21 = smov 32  }
  0x16   :  { %35 = dma.hbm_to_vmem [thread:$0]  %s1026_s2, 8192, %s30_s15, [#allocation7], %s640_s20, %s640_s20, %s641_s21  }
  0x17   :  { %632 = dma.done.wait [#allocation4], 512  }
  0x18   :  { %633 = vsyncadd [#allocation4], 4294966784 }
  0x19   :  { %634 = dma.done.wait [#allocation7], 8192  }
  0x1a   :  { %635 = vsyncadd [#allocation7], 4294959104  ;;  %v669_v0 = vld [vmem:[#allocation6 + $0x1e0] sm:$0xff]  ;;  %v671_v1 = vld [vmem:[#allocation6 + $0x1e8] sm:$0xff]  ;;  %s642_s24 = smov [#allocation8]  }
  0x1b   :  { %v673_v2 = vld [vmem:[#allocation6 + $0x1f0] sm:$0xff]  ;;  %v675_v3 = vld [vmem:[#allocation6 + $0x1f8] sm:$0xff]  ;;  %v185_v4 = vmul.f32 %v669_v0, %v669_v0  ;;  %v186_v5 = vmul.f32 %v671_v1, %v671_v1  ;;  %v683_v7 = vld [vmem:[#allocation6 + $0x1c0] sm:$0xff]  ;;  %s519_s25 = sshll.u32 %s642_s24, 4  ;;  %s520_s25 = int_to_ptr.vmem [resolvable:$true] %s519_s25 }
  0x1c   :  { %v187_v6 = vmul.f32 %v673_v2, %v673_v2  ;;  %v685_v8 = vld [vmem:[#allocation6 + $0x1c8] sm:$0xff]  ;;  %v188_v9 = vmul.f32 %v675_v3, %v675_v3  ;;  %v689_v10 = vld [vmem:[#allocation6 + $0x1d0] sm:$0xff]  ;;  %v691_v11 = vld [vmem:[#allocation6 + $0x1d8] sm:$0xff]  ;;  %v181_v12 = vmul.f32 %v683_v7, %v683_v7  ;;  %s612_s26 = scalar_lea.vmem %s520_s25, 128  ;;  %p617_p11 = scmp.lt.s32.totalorder %s520_s25, %s520_s25 }
  0x1d   :  { %v182_v13 = vmul.f32 %v685_v8, %v685_v8  ;;  %v697_v14 = vld [vmem:[#allocation6 + $0x1a0] sm:$0xff]  ;;  %v264_v15 = vadd.f32 %v186_v5, %v185_v4  ;;  %v183_v16 = vmul.f32 %v689_v10, %v689_v10  ;;  %v184_v17 = vmul.f32 %v691_v11, %v691_v11  ;;  %v703_v18 = vld [vmem:[#allocation6 + $0x1a8] sm:$0xff]  ;;  %v705_v19 = vld [vmem:[#allocation6 + $0x1b0] sm:$0xff]  ;;  %p613_p10 = scmp.ne.s32.totalorder %s520_s25, %s612_s26  ;;  %p618_p12 = scmp.lt.s32.totalorder %s612_s26, %s612_s26 }
  0x1e   :  { %v707_v20 = vld [vmem:[#allocation6 + $0x1b8] sm:$0xff]  ;;  %v177_v21 = vmul.f32 %v697_v14, %v697_v14  ;;  %v178_v23 = vmul.f32 %v703_v18, %v703_v18  ;;  %v179_v24 = vmul.f32 %v705_v19, %v705_v19  ;;  %v717_v26 = vld [vmem:[#allocation6 + $0x180] sm:$0xff]  ;;  %v719_v27 = vld [vmem:[#allocation6 + $0x188] sm:$0xff] }
  0x1f   :  { %v259_v22 = vadd.f32 %v182_v13, %v181_v12  ;;  %v180_v25 = vmul.f32 %v707_v20, %v707_v20  ;;  %v721_v28 = vld [vmem:[#allocation6 + $0x190] sm:$0xff]  ;;  %v265_v29 = vadd.f32 %v264_v15, %v187_v6  ;;  %v723_v30 = vld [vmem:[#allocation6 + $0x198] sm:$0xff]  ;;  %v173_v31 = vmul.f32 %v717_v26, %v717_v26  ;;  %v731_v34 = vld [vmem:[#allocation6 + $0x160] sm:$0xff]  ;;  %p619_p13 = por %p618_p12, %p617_p11 }
  0x20   :  { %v174_v32 = vmul.f32 %v719_v27, %v719_v27  ;;  %v175_v33 = vmul.f32 %v721_v28, %v721_v28  ;;  %v733_v35 = vld [vmem:[#allocation6 + $0x168] sm:$0xff]  ;;  %v254_v37 = vadd.f32 %v178_v23, %v177_v21  ;;  %v176_v38 = vmul.f32 %v723_v30, %v723_v30  ;;  %v737_v39 = vld [vmem:[#allocation6 + $0x170] sm:$0xff]  ;;  %v739_v40 = vld [vmem:[#allocation6 + $0x178] sm:$0xff] }
  0x21   :  { %v260_v36 = vadd.f32 %v259_v22, %v183_v16  ;;  %v169_v41 = vmul.f32 %v731_v34, %v731_v34  ;;  %v743_v42 = vld [vmem:[#allocation6 + $0x140] sm:$0xff]  ;;  %v266_v43 = vadd.f32 %v265_v29, %v188_v9  ;;  %v170_v45 = vmul.f32 %v733_v35, %v733_v35  ;;  %v749_v47 = vld [vmem:[#allocation6 + $0x148] sm:$0xff]  ;;  %v751_v48 = vld [vmem:[#allocation6 + $0x150] sm:$0xff]  ;;  %p620_p0 = pnand %p619_p13, %p613_p10 }
  0x22   :  { %v249_v44 = vadd.f32 %v174_v32, %v173_v31  ;;  %v171_v46 = vmul.f32 %v737_v39, %v737_v39  ;;  %v753_v49 = vld [vmem:[#allocation6 + $0x158] sm:$0xff]  ;;  %v255_v51 = vadd.f32 %v254_v37, %v179_v24  ;;  %v172_v52 = vmul.f32 %v739_v40, %v739_v40  ;;  %v759_v54 = vld [vmem:[#allocation6 + $0x120] sm:$0xff]  ;;  %v761_v55 = vld [vmem:[#allocation6 + $0x128] sm:$0xff] }
  0x23   :  { %v261_v50 = vadd.f32 %v260_v36, %v184_v17  ;;  %v165_v53 = vmul.f32 %v743_v42, %v743_v42  ;;  %v763_v56 = vld [vmem:[#allocation6 + $0x130] sm:$0xff]  ;;  %267 = vadd.xlane.f32.xlu0 %v266_v43  ;;  %v244_v58 = vadd.f32 %v170_v45, %v169_v41  ;;  %v166_v59 = vmul.f32 %v749_v47, %v749_v47  ;;  %v769_v61 = vld [vmem:[#allocation6 + $0x100] sm:$0xff]  ;;  %v771_v62 = vld [vmem:[#allocation6 + $0x108] sm:$0xff] }
  0x24   :  { %v250_v57 = vadd.f32 %v249_v44, %v175_v33  ;;  %v167_v60 = vmul.f32 %v751_v48, %v751_v48  ;;  %v256_v63 = vadd.f32 %v255_v51, %v180_v25  ;;  %v773_v4 = vld [vmem:[#allocation6 + $0x138] sm:$0xff]  ;;  %v161_v5 = vmul.f32 %v759_v54, %v759_v54  ;;  %v779_v9 = vld [vmem:[#allocation6 + $0x110] sm:$0xff]  ;;  %v785_v17 = vld [vmem:[#allocation6 + $0xe0] sm:$0xff] }
  0x25   :  { %v162_v6 = vmul.f32 %v761_v55, %v761_v55  ;;  %v245_v12 = vadd.f32 %v244_v58, %v171_v46  ;;  %v168_v13 = vmul.f32 %v753_v49, %v753_v49  ;;  %v239_v15 = vadd.f32 %v166_v59, %v165_v53  ;;  %v787_v21 = vld [vmem:[#allocation6 + $0xe8] sm:$0xff]  ;;  %v789_v24 = vld [vmem:[#allocation6 + $0x118] sm:$0xff]  ;;  %v795_v31 = vld [vmem:[#allocation6 + $0xf0] sm:$0xff] }
  0x26   :  { %v163_v16 = vmul.f32 %v763_v56, %v763_v56  ;;  %257 = vadd.xlane.f32.xlu1 %v256_v63  ;;  %v251_v22 = vadd.f32 %v250_v57, %v176_v38  ;;  %v157_v25 = vmul.f32 %v769_v61, %v769_v61  ;;  %v158_v29 = vmul.f32 %v771_v62, %v771_v62  ;;  %v797_v32 = vld [vmem:[#allocation6 + $0xc0] sm:$0xff]  ;;  %v803_v41 = vld [vmem:[#allocation6 + $0xf8] sm:$0xff]  ;;  %v805_v43 = vld [vmem:[#allocation6 + $0xc8] sm:$0xff] }
  0x27   :  { %v234_v23 = vadd.f32 %v162_v6, %v161_v5  ;;  %1052 = vst [vmem:[#allocation12_spill] sm:$0xff] %v795_v31  ;;  %1053 = vst [vmem:[#allocation13_spill] sm:$0xff] %v797_v32  ;;  %262 = vadd.xlane.f32.xlu0 %v261_v50  ;;  %v246_v33 = vadd.f32 %v245_v12, %v172_v52  ;;  %v240_v36 = vadd.f32 %v239_v15, %v167_v60  ;;  %v811_v51 = vld [vmem:[#allocation6 + $0xd0] sm:$0xff]  ;;  %v813_v52 = vld [vmem:[#allocation6 + $0xa0] sm:$0xff] }
  0x28   :  { %v164_v37 = vmul.f32 %v773_v4, %v773_v4  ;;  %v159_v38 = vmul.f32 %v779_v9, %v779_v9  ;;  %1054 = vst [vmem:[#allocation14_spill] sm:$0xff] %v805_v43  ;;  %v229_v45 = vadd.f32 %v158_v29, %v157_v25  ;;  %v153_v46 = vmul.f32 %v785_v17, %v785_v17  ;;  %v815_v53 = vld [vmem:[#allocation6 + $0xa8] sm:$0xff]  ;;  %v821_v60 = vld [vmem:[#allocation6 + $0xd8] sm:$0xff]  ;;  %v825_v5 = vld [vmem:[#allocation6 + $0xb0] sm:$0xff] }
  0x29   :  { %v235_v44 = vadd.f32 %v234_v23, %v163_v16  ;;  %v154_v50 = vmul.f32 %v787_v21, %v787_v21  ;;  %1055 = vst [vmem:[#allocation15_spill] sm:$0xff] %v811_v51  ;;  %1056 = vst [vmem:[#allocation16_spill] sm:$0xff] %v813_v52  ;;  %v241_v57 = vadd.f32 %v240_v36, %v168_v13  ;;  %v831_v16 = vld [vmem:[#allocation6 + $0x80] sm:$0xff]  ;;  %v833_v23 = vld [vmem:[#allocation6 + $0x88] sm:$0xff] }
  0x2a   :  { %1057 = vst [vmem:[#allocation17_spill] sm:$0xff] %v815_v53  ;;  %v160_v58 = vmul.f32 %v789_v24, %v789_v24  ;;  %v155_v59 = vmul.f32 %v795_v31, %v795_v31  ;;  %1058 = vst [vmem:[#allocation18_spill] sm:$0xff] %v821_v60  ;;  %v149_v63 = vmul.f32 %v797_v32, %v797_v32  ;;  %252 = vadd.xlane.f32.xlu1 %v251_v22  ;;  %v837_v36 = vld [vmem:[#allocation6 + $0xb8] sm:$0xff] }
  0x2b   :  { %1059 = vst [vmem:[#allocation19_spill] sm:$0xff] %v825_v5  ;;  %v230_v6 = vadd.f32 %v229_v45, %v159_v38  ;;  %v156_v12 = vmul.f32 %v803_v41, %v803_v41  ;;  %v224_v15 = vadd.f32 %v154_v50, %v153_v46  ;;  %v150_v13 = vmul.f32 %v805_v43, %v805_v43  ;;  %v843_v45 = vld [vmem:[#allocation6 + $0x90] sm:$0xff] }
  0x2c   :  { %1060 = vst [vmem:[#allocation20_spill] sm:$0xff] %v831_v16  ;;  %1061 = vst [vmem:[#allocation21_spill] sm:$0xff] %v833_v23  ;;  %247 = vadd.xlane.f32.xlu0 %v246_v33  ;;  %v236_v25 = vadd.f32 %v235_v44, %v164_v37  ;;  %v151_v29 = vmul.f32 %v811_v51, %v811_v51  ;;  %v145_v22 = vmul.f32 %v813_v52, %v813_v52  ;;  %v849_v37 = vld [vmem:[#allocation6 + $0x60] sm:$0xff]  ;;  %v851_v44 = vld [vmem:[#allocation6 + $0x68] sm:$0xff] }
  0x2d   :  { %1062 = vst [vmem:[#allocation22_spill] sm:$0xff] %v837_v36  ;;  %v146_v38 = vmul.f32 %v815_v53, %v815_v53  ;;  %1063 = vst [vmem:[#allocation23_spill] sm:$0xff] %v843_v45  ;;  %v225_v46 = vadd.f32 %v224_v15, %v155_v59  ;;  %v152_v50 = vmul.f32 %v821_v60, %v821_v60  ;;  %v853_v52 = vld [vmem:[#allocation6 + $0x98] sm:$0xff]  ;;  %v859_v15 = vld [vmem:[#allocation6 + $0x70] sm:$0xff] }
  0x2e   :  { %v219_v32 = vadd.f32 %v150_v13, %v149_v63  ;;  %v147_v33 = vmul.f32 %v825_v5, %v825_v5  ;;  %1064 = vst [vmem:[#allocation24_spill] sm:$0xff] %v849_v37  ;;  %1065 = vst [vmem:[#allocation25_spill] sm:$0xff] %v851_v44  ;;  %v231_v51 = vadd.f32 %v230_v6, %v160_v58  ;;  %v861_v63 = vld [vmem:[#allocation6 + $0x40] sm:$0xff]  ;;  %242 = vadd.xlane.f32.xlu1 %v241_v57  ;;  %v867_v6 = vld [vmem:[#allocation6 + $0x78] sm:$0xff] }
  0x2f   :  { %v214_v43 = vadd.f32 %v146_v38, %v145_v22  ;;  %1066 = vst [vmem:[#allocation26_spill] sm:$0xff] %v853_v52  ;;  %v141_v53 = vmul.f32 %v831_v16, %v831_v16  ;;  %v142_v59 = vmul.f32 %v833_v23, %v833_v23  ;;  %1067 = vst [vmem:[#allocation27_spill] sm:$0xff] %v859_v15  ;;  %v869_v22 = vld [vmem:[#allocation6 + $0x48] sm:$0xff] }
  0x30   :  { %1068 = vst [vmem:[#allocation28_spill] sm:$0xff] %v861_v63  ;;  %v226_v13 = vadd.f32 %v225_v46, %v156_v12  ;;  %v220_v5 = vadd.f32 %v219_v32, %v151_v29  ;;  %v148_v60 = vmul.f32 %v837_v36, %v837_v36  ;;  %v143_v58 = vmul.f32 %v843_v45, %v843_v45  ;;  %v875_v32 = vld [vmem:[#allocation6 + $0x50] sm:$0xff]  ;;  %v877_v12 = vld [vmem:[#allocation6 + $0x20] sm:$0xff]  ;;  %v879_v29 = vld [vmem:[#allocation6 + $0x28] sm:$0xff] }
  0x31   :  { %1069 = vst [vmem:[#allocation29_spill] sm:$0xff] %v867_v6  ;;  %1070 = vst [vmem:[#allocation30_spill] sm:$0xff] %v869_v22  ;;  %237 = vadd.xlane.f32.xlu0 %v236_v25  ;;  %v215_v38 = vadd.f32 %v214_v43, %v147_v33  ;;  %v209_v16 = vadd.f32 %v142_v59, %v141_v53  ;;  %v137_v23 = vmul.f32 %v849_v37, %v849_v37  ;;  %v887_v53 = vld [vmem:[#allocation6 + $0x30] sm:$0xff]  ;;  %v891_v45 = vld [vmem:[#allocation6] sm:$0xff] }
  0x32   :  { %v138_v57 = vmul.f32 %v851_v44, %v851_v44  ;;  %1071 = vst [vmem:[#allocation31_spill] sm:$0xff] %v875_v32  ;;  %1072 = vst [vmem:[#allocation32_spill] sm:$0xff] %v877_v12  ;;  %v144_v46 = vmul.f32 %v853_v52, %v853_v52  ;;  %v139_v25 = vmul.f32 %v859_v15, %v859_v15  ;;  %v893_v36 = vld [vmem:[#allocation6 + $0x8] sm:$0xff]  ;;  %232 = vadd.xlane.f32.xlu1 %v231_v51  ;;  %v897_v15 = vld [vmem:[#allocation6 + $0x58] sm:$0xff] }
  0x33   :  { %v133_v43 = vmul.f32 %v861_v63, %v861_v63  ;;  %v221_v33 = vadd.f32 %v220_v5, %v152_v50  ;;  %v210_v59 = vadd.f32 %v209_v16, %v143_v58  ;;  %v134_v44 = vmul.f32 %v869_v22, %v869_v22  ;;  %1073 = vst [vmem:[#allocation33_spill] sm:$0xff] %v891_v45  ;;  %v909_v22 = vld [vmem:[#allocation3] sm:$0xff] }
  0x34   :  { %v204_v37 = vadd.f32 %v138_v57, %v137_v23  ;;  %1074 = vst [vmem:[#allocation34_spill] sm:$0xff] %v893_v36  ;;  %v140_v52 = vmul.f32 %v867_v6, %v867_v6  ;;  %v135_v63 = vmul.f32 %v875_v32, %v875_v32  ;;  %v129_v5 = vmul.f32 %v877_v12, %v877_v12  ;;  %v907_v57 = vld [vmem:[#allocation6 + $0x10] sm:$0xff]  ;;  %v911_v6 = vld [vmem:[#allocation3 + $0x8] sm:$0xff]  ;;  %v913_v32 = vld [vmem:[#allocation6 + $0x38] sm:$0xff] }
  0x35   :  { %v130_v16 = vmul.f32 %v879_v29, %v879_v29  ;;  %227 = vadd.xlane.f32.xlu0 %v226_v13  ;;  %v216_v23 = vadd.f32 %v215_v38, %v148_v60  ;;  %v199_v58 = vadd.f32 %v134_v44, %v133_v43  ;;  %v131_v51 = vmul.f32 %v887_v53, %v887_v53 }
  0x36   :  { %v205_v50 = vadd.f32 %v204_v37, %v139_v25  ;;  %1075 = vst [vmem:[#allocation35_spill] sm:$0xff] %v909_v22  ;;  %v125_v12 = vmul.f32 %v891_v45, %v891_v45  ;;  %v126_v60 = vmul.f32 %v893_v36, %v893_v36  ;;  %v919_v37 = vld [vmem:[#allocation3 + $0x10] sm:$0xff]  ;;  %v211_v44 = vadd.f32 %v210_v59, %v144_v46  ;;  %v931_v36 = vld [vmem:[#allocation6 + $0x18] sm:$0xff] }
  0x37   :  { %v194_v31 = vadd.f32 %v130_v16, %v129_v5  ;;  %v136_v13 = vmul.f32 %v897_v15, %v897_v15  ;;  %v200_v38 = vadd.f32 %v199_v58, %v135_v63  ;;  %222 = vadd.xlane.f32.xlu1 %v221_v33  ;;  %v127_v25 = vmul.f32 %v907_v57, %v907_v57  ;;  %v935_v33 = vld [vmem:[#allocation3 + $0x18] sm:$0xff] }
  0x38   :  { %v189_v43 = vadd.f32 %v126_v60, %v125_v12  ;;  %v110_v5 = vmul.f32 %v909_v22, %v909_v22  ;;  %v111_v16 = vmul.f32 %v911_v6, %v911_v6  ;;  %v206_v45 = vadd.f32 %v205_v50, %v140_v52 }
  0x39   :  { %217 = vadd.xlane.f32.xlu0 %v216_v23  ;;  %v132_v46 = vmul.f32 %v913_v32, %v913_v32  ;;  %v195_v59 = vadd.f32 %v194_v31, %v131_v51  ;;  %v112_v63 = vmul.f32 %v919_v37, %v919_v37  ;;  %v201_v58 = vadd.f32 %v200_v38, %v136_v13 }
  0x3a   :  { %v114_v12 = vadd.f32 %v111_v16, %v110_v5  ;;  %v128_v60 = vmul.f32 %v931_v36, %v931_v36  ;;  %v190_v22 = vadd.f32 %v189_v43, %v127_v25  ;;  %v113_v23 = vmul.f32 %v935_v33, %v935_v33 }
  0x3b   :  { %212 = vadd.xlane.f32.xlu1 %v211_v44  ;;  %v196_v52 = vadd.f32 %v195_v59, %v132_v46  ;;  %v366_v44 = vstv %s1024_s0 }
  0x3c   :  { %v115_v31 = vadd.f32 %v114_v12, %v112_v63  ;;  %v191_v50 = vadd.f32 %v190_v22, %v128_v60  ;;  %v367_v13 = vmul.f32 1.442695, %v366_v44 }
  0x3d   :  { %207 = vadd.xlane.f32.xlu0 %v206_v45 }
  0x3e   :  { %v116_v51 = vadd.f32 %v115_v31, %v113_v23  ;;  %536 = vpow2.f32 %v367_v13 }
  0x3f   :  { %202 = vadd.xlane.f32.xlu1 %v201_v58 }
  0x41   :  { %197 = vadd.xlane.f32.xlu0 %v196_v52 }
  0x43   :  { %192 = vadd.xlane.f32.xlu1 %v191_v50 }
  0x45   :  { %117 = vadd.xlane.f32.xlu0 %v116_v51 }
  0x4b   :  { %v537_v38 = vpop.eup %536 }
  0x4c   :  { %529 = vpush %v537_v38 }
  0x7d   :  { %s530_s0 = spop %529 }
  0xac   :  { %v268_v45 = vpop.xlane.xlu0 %267 }
  0xad   :  { %v284_v25 = vadd.f32 1e-12, %v268_v45 }
  0xaf   :  { %538 = vrsqrt.f32 %v284_v25  ;;  %v258_v43 = vpop.xlane.xlu1 %257 }
  0xb0   :  { %v263_v5 = vpop.xlane.xlu0 %262  ;;  %v282_v16 = vadd.f32 1e-12, %v258_v43 }
  0xb1   :  { %v283_v46 = vadd.f32 1e-12, %v263_v5 }
  0xb2   :  { %540 = vrsqrt.f32 %v282_v16 }
  0xb3   :  { %542 = vrsqrt.f32 %v283_v46  ;;  %v253_v22 = vpop.xlane.xlu1 %252 }
  0xb4   :  { %v281_v59 = vadd.f32 1e-12, %v253_v22 }
  0xb5   :  { %v248_v63 = vpop.xlane.xlu0 %247 }
  0xb6   :  { %v280_v12 = vadd.f32 1e-12, %v248_v63  ;;  %544 = vrsqrt.f32 %v281_v59 }
  0xb7   :  { %v243_v58 = vpop.xlane.xlu1 %242 }
  0xb8   :  { %v279_v60 = vadd.f32 1e-12, %v243_v58  ;;  %546 = vrsqrt.f32 %v280_v12 }
  0xba   :  { %v238_v52 = vpop.xlane.xlu0 %237  ;;  %548 = vrsqrt.f32 %v279_v60 }
  0xbb   :  { %v278_v31 = vadd.f32 1e-12, %v238_v52  ;;  %v233_v45 = vpop.xlane.xlu1 %232 }
  0xbc   :  { %v539_v23 = vpop.eup %538  ;;  %v277_v46 = vadd.f32 1e-12, %v233_v45 }
  0xbd   :  { %v362_v51 = vmul.f32 %v539_v23, %v671_v1  ;;  %v364_v44 = vmul.f32 %v539_v23, %v675_v3  ;;  %v361_v13 = vmul.f32 %v539_v23, %v669_v0  ;;  %v363_v38 = vmul.f32 %v539_v23, %v673_v2 }
  0xbe   :  { %v228_v50 = vpop.xlane.xlu0 %227  ;;  %550 = vrsqrt.f32 %v278_v31 }
  0xbf   :  { %v541_v25 = vpop.eup %540  ;;  %370 = vmatprep.subr.mxu0 %v362_v51  ;;  %440 = vmatprep.subr.mxu1 %v364_v44  ;;  %552 = vrsqrt.f32 %v277_v46 }
  0xc0   :  { %v543_v43 = vpop.eup %542  ;;  %371 = vmatpush1.xpose.msra.mxu0 %v361_v13  ;;  %441 = vmatpush1.xpose.msra.mxu1 %v363_v38  ;;  %v354_v5 = vmul.f32 %v541_v25, %v703_v18  ;;  %v356_v16 = vmul.f32 %v541_v25, %v707_v20  ;;  %v353_v63 = vmul.f32 %v541_v25, %v697_v14 }
  0xc1   :  { %v358_v3 = vmul.f32 %v543_v43, %v685_v8  ;;  %v360_v0 = vmul.f32 %v543_v43, %v691_v11  ;;  %v357_v2 = vmul.f32 %v543_v43, %v683_v7  ;;  %v359_v22 = vmul.f32 %v543_v43, %v689_v10  ;;  %v223_v10 = vpop.xlane.xlu1 %222 }
  0xc2   :  { %v218_v1 = vpop.xlane.xlu0 %217  ;;  %v355_v18 = vmul.f32 %v541_v25, %v705_v19  ;;  %v276_v7 = vadd.f32 1e-12, %v228_v50 }
  0xc3   :  { %v545_v59 = vpop.eup %544  ;;  %372 = vmatprep.subr.mxu0 %v358_v3  ;;  %442 = vmatprep.subr.mxu1 %v360_v0 }
  0xc4   :  { %373 = vmatpush1.xpose.msra.mxu0 %v357_v2  ;;  %443 = vmatpush1.xpose.msra.mxu1 %v359_v22  ;;  %v350_v8 = vmul.f32 %v545_v59, %v719_v27  ;;  %v352_v11 = vmul.f32 %v545_v59, %v723_v30  ;;  %v349_v58 = vmul.f32 %v545_v59, %v717_v26  ;;  %554 = vrsqrt.f32 %v276_v7  ;;  %v1078_v2 = vld [vmem:[#allocation18_spill] sm:$0xff]  ;;  %v1081_v7 = vld [vmem:[#allocation17_spill] sm:$0xff] }
  0xc5   :  { %374 = vmatprep.subr.mxu0 %v354_v5  ;;  %444 = vmatprep.subr.mxu1 %v356_v16  ;;  %v547_v12 = vpop.eup %546  ;;  %v351_v60 = vmul.f32 %v545_v59, %v721_v28  ;;  %v275_v30 = vadd.f32 1e-12, %v223_v10  ;;  %v274_v26 = vadd.f32 1e-12, %v218_v1  ;;  %v213_v13 = vpop.xlane.xlu1 %212  ;;  %v1076_v1 = vld [vmem:[#allocation12_spill] sm:$0xff]  ;;  %v1082_v10 = vld [vmem:[#allocation22_spill] sm:$0xff] }
  0xc6   :  { %v208_v20 = vpop.xlane.xlu0 %207  ;;  %v346_v52 = vmul.f32 %v547_v12, %v733_v35  ;;  %v348_v27 = vmul.f32 %v547_v12, %v739_v40  ;;  %v345_v23 = vmul.f32 %v547_v12, %v731_v34  ;;  %v347_v31 = vmul.f32 %v547_v12, %v737_v39 }
  0xc7   :  { %v549_v19 = vpop.eup %548  ;;  %556 = vrsqrt.f32 %v275_v30  ;;  %v273_v45 = vadd.f32 1e-12, %v213_v13  ;;  %v272_v43 = vadd.f32 1e-12, %v208_v20 }
  0xc8   :  { %375 = vmatpush1.xpose.msra.mxu0 %v353_v63  ;;  %445 = vmatpush1.xpose.msra.mxu1 %v355_v18  ;;  %v342_v51 = vmul.f32 %v549_v19, %v749_v47  ;;  %v344_v44 = vmul.f32 %v549_v19, %v753_v49  ;;  %v341_v40 = vmul.f32 %v549_v19, %v743_v42  ;;  %v1079_v18 = vld [vmem:[#allocation13_spill] sm:$0xff] }
  0xc9   :  { %376 = vmatprep.subr.mxu0 %v350_v8  ;;  %446 = vmatprep.subr.mxu1 %v352_v11  ;;  %v343_v34 = vmul.f32 %v549_v19, %v751_v48  ;;  %v1080_v8 = vld [vmem:[#allocation15_spill] sm:$0xff] }
  0xca   :  { %v960_v14 = vpop.xlane.xlu0 %197  ;;  %v1084_v19 = vld [vmem:[#allocation19_spill] sm:$0xff] }
  0xcb   :  { %v551_v28 = vpop.eup %550 }
  0xcc   :  { %377 = vmatpush1.xpose.msra.mxu0 %v349_v58  ;;  %447 = vmatpush1.xpose.msra.mxu1 %v351_v60  ;;  %v338_v39 = vmul.f32 %v551_v28, %v761_v55  ;;  %v340_v38 = vmul.f32 %v551_v28, %v773_v4  ;;  %v553_v47 = vpop.eup %552  ;;  %v337_v49 = vmul.f32 %v551_v28, %v759_v54  ;;  %v203_v55 = vpop.xlane.xlu1 %202 }
  0xcd   :  { %378 = vmatprep.subr.mxu0 %v346_v52  ;;  %448 = vmatprep.subr.mxu1 %v348_v27  ;;  %v339_v25 = vmul.f32 %v551_v28, %v763_v56  ;;  %v334_v42 = vmul.f32 %v553_v47, %v771_v62  ;;  %v336_v48 = vmul.f32 %v553_v47, %v789_v24  ;;  %v271_v46 = vadd.f32 1e-12, %v203_v55  ;;  %v1085_v27 = vld [vmem:[#allocation21_spill] sm:$0xff] }
  0xce   :  { %v118_v50 = vpop.xlane.xlu0 %117  ;;  %v333_v4 = vmul.f32 %v553_v47, %v769_v61  ;;  %v335_v16 = vmul.f32 %v553_v47, %v779_v9  ;;  %v1077_v61 = vld [vmem:[#allocation14_spill] sm:$0xff]  ;;  %v1092_v47 = vld [vmem:[#allocation27_spill] sm:$0xff] }
  0xcf   :  { %v119_v35 = vadd.f32 1e-12, %v118_v50  ;;  %v1087_v50 = vld [vmem:[#allocation20_spill] sm:$0xff] }
  0xd0   :  { %379 = vmatpush1.xpose.msra.mxu0 %v345_v23  ;;  %449 = vmatpush1.xpose.msra.mxu1 %v347_v31  ;;  %v193_v59 = vpop.xlane.xlu1 %192  ;;  %v1086_v23 = vld [vmem:[#allocation26_spill] sm:$0xff] }
  0xd1   :  { %558 = vrsqrt.f32 %v119_v35  ;;  %380 = vmatprep.subr.mxu0 %v342_v51  ;;  %450 = vmatprep.subr.mxu1 %v344_v44  ;;  %v555_v5 = vpop.eup %554  ;;  %v269_v60 = vadd.f32 1e-12, %v193_v59  ;;  %v1088_v51 = vld [vmem:[#allocation23_spill] sm:$0xff]  ;;  %v1089_v35 = vld [vmem:[#allocation25_spill] sm:$0xff] }
  0xd2   :  { %560 = vrsqrt.f32 %v274_v26  ;;  %v330_v54 = vmul.f32 %v555_v5, %v787_v21  ;;  %v332_v56 = vmul.f32 %v555_v5, %v803_v41  ;;  %v329_v24 = vmul.f32 %v555_v5, %v785_v17 }
  0xd3   :  { %562 = vrsqrt.f32 %v273_v45  ;;  %v331_v3 = vmul.f32 %v555_v5, %v1076_v1  ;;  %v270_v21 = vadd.f32 1e-12, %v960_v14  ;;  %v1094_v5 = vld [vmem:[#allocation28_spill] sm:$0xff]  ;;  %v1097_v1 = vld [vmem:[#allocation34_spill] sm:$0xff] }
  0xd4   :  { %381 = vmatpush1.xpose.msra.mxu0 %v341_v40  ;;  %451 = vmatpush1.xpose.msra.mxu1 %v343_v34  ;;  %564 = vrsqrt.f32 %v272_v43  ;;  %v557_v62 = vpop.eup %556  ;;  %v1090_v40 = vld [vmem:[#allocation29_spill] sm:$0xff] }
  0xd5   :  { %382 = vmatprep.subr.mxu0 %v338_v39  ;;  %452 = vmatprep.subr.mxu1 %v340_v38  ;;  %566 = vrsqrt.f32 %v271_v46  ;;  %v326_v9 = vmul.f32 %v557_v62, %v1077_v61  ;;  %v328_v22 = vmul.f32 %v557_v62, %v1078_v2  ;;  %v325_v20 = vmul.f32 %v557_v62, %v1079_v18  ;;  %v1091_v38 = vld [vmem:[#allocation24_spill] sm:$0xff] }
  0xd6   :  { %v327_v11 = vmul.f32 %v557_v62, %v1080_v8  ;;  %568 = vrsqrt.f32 %v270_v21  ;;  %v1096_v62 = vld [vmem:[#allocation32_spill] sm:$0xff] }
  0xd7   :  { %570 = vrsqrt.f32 %v269_v60 }
  0xd8   :  { %383 = vmatpush1.xpose.msra.mxu0 %v337_v49  ;;  %453 = vmatpush1.xpose.msra.mxu1 %v339_v25  ;;  %v1093_v25 = vld [vmem:[#allocation30_spill] sm:$0xff] }
  0xd9   :  { %384 = vmatprep.subr.mxu0 %v334_v42  ;;  %454 = vmatprep.subr.mxu1 %v336_v48 }
  0xdc   :  { %385 = vmatpush1.xpose.msra.mxu0 %v333_v4  ;;  %455 = vmatpush1.xpose.msra.mxu1 %v335_v16  ;;  %v1095_v4 = vld [vmem:[#allocation31_spill] sm:$0xff] }
  0xdd   :  { %386 = vmatprep.subr.mxu0 %v330_v54  ;;  %456 = vmatprep.subr.mxu1 %v332_v56 }
  0xde   :  { %v982_v0 = vpop.eup %558 }
  0xdf   :  { %v561_v41 = vpop.eup %560  ;;  %v122_v63 = vmul.f32 %v982_v0, %v911_v6  ;;  %v124_v17 = vmul.f32 %v982_v0, %v935_v33  ;;  %v1083_v6 = vld [vmem:[#allocation16_spill] sm:$0xff] }
  0xe0   :  { %387 = vmatpush1.xpose.msra.mxu0 %v329_v24  ;;  %457 = vmatpush1.xpose.msra.mxu1 %v331_v3  ;;  %v322_v12 = vmul.f32 %v561_v41, %v1081_v7  ;;  %v324_v58 = vmul.f32 %v561_v41, %v1082_v10  ;;  %v563_v14 = vpop.eup %562  ;;  %v321_v33 = vmul.f32 %v561_v41, %v1083_v6 }
  0xe1   :  { %388 = vmatprep.subr.mxu0 %v326_v9  ;;  %458 = vmatprep.subr.mxu1 %v328_v22  ;;  %v323_v52 = vmul.f32 %v561_v41, %v1084_v19  ;;  %v318_v30 = vmul.f32 %v563_v14, %v1085_v27  ;;  %v320_v31 = vmul.f32 %v563_v14, %v1086_v23  ;;  %v565_v26 = vpop.eup %564  ;;  %v1098_v9 = vld [vmem:[#allocation33_spill] sm:$0xff]  ;;  %v510_v41 = vstv %s530_s0 }
  0xe2   :  { %434 = vmatprep.mubr.f32.mxu0 %v122_v63  ;;  %504 = vmatprep.mubr.f32.mxu1 %v124_v17  ;;  %v317_v28 = vmul.f32 %v563_v14, %v1087_v50  ;;  %v319_v44 = vmul.f32 %v563_v14, %v1088_v51  ;;  %v314_v13 = vmul.f32 %v565_v26, %v1089_v35  ;;  %v567_v39 = vpop.eup %566 }
  0xe3   :  { %v316_v34 = vmul.f32 %v565_v26, %v1090_v40  ;;  %v313_v45 = vmul.f32 %v565_v26, %v1091_v38  ;;  %v315_v49 = vmul.f32 %v565_v26, %v1092_v47  ;;  %v310_v42 = vmul.f32 %v567_v39, %v1093_v25  ;;  %v569_v43 = vpop.eup %568 }
  0xe4   :  { %389 = vmatpush1.xpose.msra.mxu0 %v325_v20  ;;  %459 = vmatpush1.xpose.msra.mxu1 %v327_v11  ;;  %v312_v48 = vmul.f32 %v567_v39, %v897_v15  ;;  %v309_v55 = vmul.f32 %v567_v39, %v1094_v5  ;;  %v311_v16 = vmul.f32 %v567_v39, %v1095_v4  ;;  %v571_v46 = vpop.eup %570 }
  0xe5   :  { %390 = vmatprep.subr.mxu0 %v322_v12  ;;  %460 = vmatprep.subr.mxu1 %v324_v58  ;;  %v306_v54 = vmul.f32 %v569_v43, %v879_v29  ;;  %v308_v56 = vmul.f32 %v569_v43, %v913_v32  ;;  %v305_v24 = vmul.f32 %v569_v43, %v1096_v62  ;;  %v1099_v32 = vld [vmem:[#allocation35_spill] sm:$0xff] }
  0xe6   :  { %v307_v15 = vmul.f32 %v569_v43, %v887_v53  ;;  %v302_v3 = vmul.f32 %v571_v46, %v1097_v1  ;;  %v304_v61 = vmul.f32 %v571_v46, %v931_v36  ;;  %v301_v2 = vmul.f32 %v571_v46, %v1098_v9 }
  0xe7   :  { %v303_v29 = vmul.f32 %v571_v46, %v907_v57  ;;  %v121_v22 = vmul.f32 %v982_v0, %v1099_v32  ;;  %v123_v53 = vmul.f32 %v982_v0, %v919_v37 }
  0xe8   :  { %391 = vmatpush1.xpose.msra.mxu0 %v321_v33  ;;  %461 = vmatpush1.xpose.msra.mxu1 %v323_v52 }
  0xe9   :  { %392 = vmatprep.subr.mxu0 %v318_v30  ;;  %462 = vmatprep.subr.mxu1 %v320_v31 }
  0xec   :  { %393 = vmatpush1.xpose.msra.mxu0 %v317_v28  ;;  %463 = vmatpush1.xpose.msra.mxu1 %v319_v44 }
  0xed   :  { %394 = vmatprep.subr.mxu0 %v314_v13  ;;  %464 = vmatprep.subr.mxu1 %v316_v34 }
  0xf0   :  { %395 = vmatpush1.xpose.msra.mxu0 %v313_v45  ;;  %465 = vmatpush1.xpose.msra.mxu1 %v315_v49 }
  0xf1   :  { %396 = vmatprep.subr.mxu0 %v310_v42  ;;  %466 = vmatprep.subr.mxu1 %v312_v48 }
  0xf4   :  { %397 = vmatpush1.xpose.msra.mxu0 %v309_v55  ;;  %467 = vmatpush1.xpose.msra.mxu1 %v311_v16 }
  0xf5   :  { %398 = vmatprep.subr.mxu0 %v306_v54  ;;  %468 = vmatprep.subr.mxu1 %v308_v56 }
  0xf8   :  { %399 = vmatpush1.xpose.msra.mxu0 %v305_v24  ;;  %469 = vmatpush1.xpose.msra.mxu1 %v307_v15 }
  0xf9   :  { %400 = vmatprep.subr.mxu0 %v302_v3  ;;  %470 = vmatprep.subr.mxu1 %v304_v61 }
  0xfc   :  { %401 = vmatpush1.xpose.msra.mxu0 %v301_v2  ;;  %471 = vmatpush1.xpose.msra.mxu1 %v303_v29 }
  0xff   :  { %435 = vmatmul.mubr.f32.vlgmr.msra.gmra.mxu0 %v121_v22  ;;  %505 = vmatmul.mubr.f32.vlgmr.msra.gmra.mxu1 %v123_v53 }
 0x1bf   :  { %v436_v36 = vpop.f32.mrf.mxu0  ;;  %v506_v21 = vpop.f32.mrf.mxu1 }
 0x1c0   :  { %v507_v59 = vadd.f32 %v506_v21, %v436_v36 }
 0x1c1   :  { %v438_v57 = vpop.f32.mrf.mxu0  ;;  %v508_v63 = vpop.f32.mrf.mxu1 }
 0x1c2   :  { %v511_v17 = vmul.f32 %v510_v41, %v507_v59 }
 0x1c4   :  { %512 = vst [vmem:[#allocation8] sm:$0xff] %v511_v17 }
 0x1c5   :  { %623 = shalt.err (!%p620_p0)
}
 0x1c6   :  { %522 = dma.vmem_to_hbm [thread:$0]  %s520_s25, 128, %s1027_s3, [#allocation5]  }
 0x1c7   :  { %636 = dma.done.wait [#allocation5], 128  }
 0x1c8   :  { %637 = vsyncadd [#allocation5], 4294967168 }
 0x1c9   :  { %526 = vsyncpa [#allocation4], 1 }
 0x1ca   :  { %527 = vsyncpa [#allocation7], 1 }
 0x1cb   :  { %528 = vsyncpa [#allocation5], 1 }

</bundles_post_ra>
